<compile_context>
chip_gen: v7x
topology: tpu7x:2x2x1
jax: 0.10.0
libtpu: 0.0.40
codegen_flags: <defaults>
</compile_context>

<pallas_src>
import functools
import math

import jax
import jax.numpy as jnp
from jax.experimental import pallas as pl
from jax.experimental.pallas import tpu as pltpu

LANE = 128  # TPU lane width; each of K/Q/V gets its own 128-lane block.


def _head_kernel(x_ref, wqkv_ref, o_ref, *, batch, seq_len, head_size):
    """Single-step kernel: fused QKV projection + per-batch causal attention.

    x_ref:    (B*T, C)       input activations (VMEM), f32
    wqkv_ref: (C, 3*LANE)    [Wk | Wq | Wv], each zero-padded to 128 lanes
    o_ref:    (B*T, LANE)    lane-dense output; columns >= head_size are zero
    """
    T = seq_len
    H = head_size

    # Fused QKV projection: one MXU contraction over the embedding dim.
    # f32 operands / f32 accumulation (bf16 buys nothing at these sizes and
    # costs VPU packs + accuracy).
    x = x_ref[...]                                 # (B*T, C) f32
    wqkv = wqkv_ref[...]                           # (C, 3*LANE) f32
    qkv = jnp.dot(x, wqkv, preferred_element_type=jnp.float32)  # (B*T, 3*LANE)

    scale = 1.0 / math.sqrt(H)

    # Batch-invariant causal mask, built once for the whole kernel call.
    row_ids = jax.lax.broadcasted_iota(jnp.int32, (T, T), 0)
    col_ids = jax.lax.broadcasted_iota(jnp.int32, (T, T), 1)
    causal = row_ids >= col_ids

    # Static unroll over the (tiny) batch: no per-step pipeline overhead.
    for b in range(batch):
        blk = qkv[b * T:(b + 1) * T, :]            # (T, 3*LANE) static slice
        # Whole 128-lane-tile slices (no masked lane selects / rotates).
        k = blk[:, 0 * LANE:1 * LANE]              # (T, 128), lanes >= H are 0
        q = blk[:, 1 * LANE:2 * LANE] * scale      # scale folded into q
        v = blk[:, 2 * LANE:3 * LANE]

        # q @ k^T as a direct contraction over the feature dim (no explicit
        # transpose of k).  The zero-padded lanes contribute nothing.
        wei = jax.lax.dot_general(
            q, k,
            dimension_numbers=(((1,), (1,)), ((), ())),
            preferred_element_type=jnp.float32)    # (T, T) f32

        # Causal mask + numerically stable softmax.  -inf masking is safe
        # here only because the causal diagonal guarantees at least one
        # finite entry per row (otherwise max=-inf would produce NaN).
        wei = jnp.where(causal, wei, -jnp.inf)
        wei = jnp.exp(wei - jnp.max(wei, axis=-1, keepdims=True))
        wei = wei / jnp.sum(wei, axis=-1, keepdims=True)

        # Dropout on the attention matrix: identity in eval mode.
        # TODO(synk): training-mode dropout would use pltpu.prng_seed /
        #             pltpu.prng_random_bits to mask `wei`.

        # Weighted value aggregation; padded V columns are zero, so the
        # padded output columns are exactly zero -> full-lane unmasked store.
        out = jnp.dot(wei, v, preferred_element_type=jnp.float32)  # (T, 128)
        o_ref[b * T:(b + 1) * T, :] = out.astype(o_ref.dtype)


def fuse_head_weights(wk, wq, wv):
    """One-time (init-time) weight fusion: (C,H) x3 -> lane-padded (C, 3*128).

    Call this ONCE when parameters are created/loaded, NOT per forward call.
    """
    C, H = wk.shape
    assert H <= LANE, "head_size must fit in one 128-lane block"
    pad = ((0, 0), (0, LANE - H))
    return jnp.concatenate(
        [jnp.pad(wk, pad), jnp.pad(wq, pad), jnp.pad(wv, pad)], axis=1)


def head_forward(x, w_qkv_fused, head_size):
    """x: (B, T, C) f32; w_qkv_fused: (C, 3*128) from fuse_head_weights.

    Returns (B, T, head_size).
    """
    B, T, C = x.shape
    H = head_size
    x2d = x.reshape(B * T, C)                      # free (contiguous) reshape

    kernel = functools.partial(_head_kernel, batch=B, seq_len=T, head_size=H)

    # Advisory cost hint so XLA can schedule/overlap this tiny custom call.
    flops = (2 * B * T * C * 3 * LANE            # fused QKV projection
             + B * (2 * T * T * LANE) * 2)       # QK^T and PV per batch
    bytes_accessed = 4 * (B * T * C + C * 3 * LANE + B * T * LANE)
    cost = pl.CostEstimate(flops=flops,
                           transcendentals=B * T * T,   # exp() count
                           bytes_accessed=bytes_accessed)

    out2d = pl.pallas_call(
        kernel,
        out_shape=jax.ShapeDtypeStruct((B * T, LANE), x.dtype),
        # Single invocation, whole arrays resident in VMEM (no grid).
        in_specs=[
            pl.BlockSpec(memory_space=pltpu.MemorySpace.VMEM),
            pl.BlockSpec(memory_space=pltpu.MemorySpace.VMEM),
        ],
        out_specs=pl.BlockSpec(memory_space=pltpu.MemorySpace.VMEM),
        cost_estimate=cost,
    )(x2d, w_qkv_fused)

    # Drop the zero-padded lanes; in a multi-head model this slice disappears
    # because the fused-heads output is already lane-dense.
    return out2d[:, :H].reshape(B, T, H)


def reference_forward(x, wk, wq, wv):
    """Pure-JAX f32 reference matching the PyTorch forward (eval mode)."""
    k = x @ wk
    q = x @ wq
    v = x @ wv
    wei = (q @ jnp.swapaxes(k, -2, -1)) * (1.0 / math.sqrt(q.shape[-1]))
    T = x.shape[1]
    tril = jnp.tril(jnp.ones((T, T)))
    wei = jnp.where(tril == 0, -jnp.inf, wei)
    wei = jax.nn.softmax(wei, axis=-1)
    return wei @ v


if __name__ == "__main__":
    # Small shapes consistent with the module's forward:
    # batch=2, seq=8, n_embed=32, head_size=16.
    B, T, C, H = 2, 8, 32, 16

    key = jax.random.PRNGKey(0)
    kx, kk, kq, kv = jax.random.split(key, 4)

    x = jax.random.normal(kx, (B, T, C), dtype=jnp.float32)

    # Deterministic init mimicking nn.Linear default: U(-1/sqrt(C), 1/sqrt(C)).
    bound = 1.0 / math.sqrt(C)
    wk = jax.random.uniform(kk, (C, H), jnp.float32, -bound, bound)
    wq = jax.random.uniform(kq, (C, H), jnp.float32, -bound, bound)
    wv = jax.random.uniform(kv, (C, H), jnp.float32, -bound, bound)

    # One-time weight fusion (init-time, outside the per-call hot path).
    w_qkv = jax.block_until_ready(fuse_head_weights(wk, wq, wv))

    out = head_forward(x, w_qkv, H)
    out = jax.block_until_ready(out)

    ref = reference_forward(x, wk, wq, wv)
    assert out.shape == (B, T, H)
    # f32 end-to-end (no bf16 casts, exact softmax divide) -> tight tolerance.
    assert jnp.allclose(out, ref, atol=1e-5, rtol=1e-5), "mismatch vs reference"

    print("KERNEL_OK")
</pallas_src>

<mosaic_0001>
module attributes {stable_mosaic.version = 11 : i64} {
  func.func @_head_kernel(%arg0: memref<16x32xf32, #tpu.memory_space<vmem>>, %arg1: memref<32x384xf32, #tpu.memory_space<vmem>>, %arg2: memref<16x128xf32, #tpu.memory_space<vmem>>) attributes {dimension_semantics = [], scalar_prefetch = 0 : i64, scratch_operands = 0 : i64, tpu.core_type = #tpu.core_type<tc>} {
    %c0 = arith.constant 0 : index
    %c0_0 = arith.constant 0 : index
    %0 = vector.load %arg0[%c0, %c0_0] : memref<16x32xf32, #tpu.memory_space<vmem>>, vector<16x32xf32>
    %c0_1 = arith.constant 0 : index
    %c0_2 = arith.constant 0 : index
    %1 = vector.load %arg1[%c0_1, %c0_2] : memref<32x384xf32, #tpu.memory_space<vmem>>, vector<32x384xf32>
    %cst = arith.constant dense<0.000000e+00> : vector<16x384xf32>
    %2 = tpu.matmul %0, %1, %cst {dimension_numbers = #tpu.dot_dimension_numbers<[1], [0], [0], [1], [0, 0, 1, 1], [], []>} : vector<16x32xf32>, vector<32x384xf32>, vector<16x384xf32> -> vector<16x384xf32>
    %3 = tpu.iota {dimensions = array<i32: 0>} : vector<8x8xi32>
    %4 = tpu.iota {dimensions = array<i32: 1>} : vector<8x8xi32>
    %5 = arith.cmpi sge, %3, %4 : vector<8x8xi32>
    %6 = vector.extract_strided_slice %2 {offsets = [0, 0], sizes = [8, 384], strides = [1, 1]} : vector<16x384xf32> to vector<8x384xf32>
    %7 = vector.extract_strided_slice %6 {offsets = [0, 0], sizes = [8, 128], strides = [1, 1]} : vector<8x384xf32> to vector<8x128xf32>
    %8 = vector.extract_strided_slice %6 {offsets = [0, 128], sizes = [8, 128], strides = [1, 1]} : vector<8x384xf32> to vector<8x128xf32>
    %cst_3 = arith.constant 2.500000e-01 : f32
    %9 = vector.broadcast %cst_3 : f32 to vector<8x128xf32>
    %10 = arith.mulf %8, %9 : vector<8x128xf32>
    %11 = vector.extract_strided_slice %6 {offsets = [0, 256], sizes = [8, 128], strides = [1, 1]} : vector<8x384xf32> to vector<8x128xf32>
    %cst_4 = arith.constant dense<0.000000e+00> : vector<8x8xf32>
    %12 = tpu.matmul %10, %7, %cst_4 {dimension_numbers = #tpu.dot_dimension_numbers<[1], [1], [0], [0], [0, 0, 1, 0], [], []>} : vector<8x128xf32>, vector<8x128xf32>, vector<8x8xf32> -> vector<8x8xf32>
    %cst_5 = arith.constant 0xFF800000 : f32
    %13 = vector.broadcast %cst_5 : f32 to vector<8x8xf32>
    %14 = arith.select %5, %12, %13 : vector<8x8xi1>, vector<8x8xf32>
    %cst_6 = arith.constant dense<0xFF800000> : vector<8xf32>
    %15 = vector.multi_reduction <maximumf>, %14, %cst_6 [1] : vector<8x8xf32> to vector<8xf32>
    %16 = vector.shape_cast %15 : vector<8xf32> to vector<8x1xf32>
    %17 = vector.broadcast %16 : vector<8x1xf32> to vector<8x8xf32>
    %18 = arith.subf %14, %17 : vector<8x8xf32>
    %19 = math.exp %18 : vector<8x8xf32>
    %cst_7 = arith.constant dense<0.000000e+00> : vector<8xf32>
    %20 = vector.multi_reduction <add>, %19, %cst_7 [1] : vector<8x8xf32> to vector<8xf32>
    %21 = vector.shape_cast %20 : vector<8xf32> to vector<8x1xf32>
    %22 = vector.broadcast %21 : vector<8x1xf32> to vector<8x8xf32>
    %23 = arith.divf %19, %22 : vector<8x8xf32>
    %cst_8 = arith.constant dense<0.000000e+00> : vector<8x128xf32>
    %24 = tpu.matmul %23, %11, %cst_8 {dimension_numbers = #tpu.dot_dimension_numbers<[1], [0], [0], [1], [0, 0, 1, 1], [], []>} : vector<8x8xf32>, vector<8x128xf32>, vector<8x128xf32> -> vector<8x128xf32>
    %c0_9 = arith.constant 0 : index
    %c0_10 = arith.constant 0 : index
    %25 = vector.load %arg2[%c0_9, %c0_10] : memref<16x128xf32, #tpu.memory_space<vmem>>, vector<8x128xf32>
    tpu.vector_store %arg2[%c0_9, %c0_10], %24 {strides = array<i32>} : memref<16x128xf32, #tpu.memory_space<vmem>>, vector<8x128xf32>,
    %26 = vector.extract_strided_slice %2 {offsets = [8, 0], sizes = [8, 384], strides = [1, 1]} : vector<16x384xf32> to vector<8x384xf32>
    %27 = vector.extract_strided_slice %26 {offsets = [0, 0], sizes = [8, 128], strides = [1, 1]} : vector<8x384xf32> to vector<8x128xf32>
    %28 = vector.extract_strided_slice %26 {offsets = [0, 128], sizes = [8, 128], strides = [1, 1]} : vector<8x384xf32> to vector<8x128xf32>
    %cst_11 = arith.constant 2.500000e-01 : f32
    %29 = vector.broadcast %cst_11 : f32 to vector<8x128xf32>
    %30 = arith.mulf %28, %29 : vector<8x128xf32>
    %31 = vector.extract_strided_slice %26 {offsets = [0, 256], sizes = [8, 128], strides = [1, 1]} : vector<8x384xf32> to vector<8x128xf32>
    %cst_12 = arith.constant dense<0.000000e+00> : vector<8x8xf32>
    %32 = tpu.matmul %30, %27, %cst_12 {dimension_numbers = #tpu.dot_dimension_numbers<[1], [1], [0], [0], [0, 0, 1, 0], [], []>} : vector<8x128xf32>, vector<8x128xf32>, vector<8x8xf32> -> vector<8x8xf32>
    %cst_13 = arith.constant 0xFF800000 : f32
    %33 = vector.broadcast %cst_13 : f32 to vector<8x8xf32>
    %34 = arith.select %5, %32, %33 : vector<8x8xi1>, vector<8x8xf32>
    %cst_14 = arith.constant dense<0xFF800000> : vector<8xf32>
    %35 = vector.multi_reduction <maximumf>, %34, %cst_14 [1] : vector<8x8xf32> to vector<8xf32>
    %36 = vector.shape_cast %35 : vector<8xf32> to vector<8x1xf32>
    %37 = vector.broadcast %36 : vector<8x1xf32> to vector<8x8xf32>
    %38 = arith.subf %34, %37 : vector<8x8xf32>
    %39 = math.exp %38 : vector<8x8xf32>
    %cst_15 = arith.constant dense<0.000000e+00> : vector<8xf32>
    %40 = vector.multi_reduction <add>, %39, %cst_15 [1] : vector<8x8xf32> to vector<8xf32>
    %41 = vector.shape_cast %40 : vector<8xf32> to vector<8x1xf32>
    %42 = vector.broadcast %41 : vector<8x1xf32> to vector<8x8xf32>
    %43 = arith.divf %39, %42 : vector<8x8xf32>
    %cst_16 = arith.constant dense<0.000000e+00> : vector<8x128xf32>
    %44 = tpu.matmul %43, %31, %cst_16 {dimension_numbers = #tpu.dot_dimension_numbers<[1], [0], [0], [1], [0, 0, 1, 1], [], []>} : vector<8x8xf32>, vector<8x128xf32>, vector<8x128xf32> -> vector<8x128xf32>
    %c8 = arith.constant 8 : index
    %c0_17 = arith.constant 0 : index
    %45 = vector.load %arg2[%c8, %c0_17] : memref<16x128xf32, #tpu.memory_space<vmem>>, vector<8x128xf32>
    tpu.vector_store %arg2[%c8, %c0_17], %44 {strides = array<i32>} : memref<16x128xf32, #tpu.memory_space<vmem>>, vector<8x128xf32>,
    return
  }
}

</mosaic_0001>

<bundles_post_ra>
// kernel: tpu_custom_call.1
= control target key start
LH: loop header
LB: loop body
LE: loop exit
PB: predicated region body
PF: predicated region fallthrough
CT: control target
= control target key end

     0   :  { %7 = vsyncpa [#allocation3], 0  ;;  %s797_s0 = inlined_call_operand.hbm [shape: f32[16,32], index: 0, kind: input, shape index: {}]   ;;  %s798_s1 = inlined_call_operand.hbm [shape: f32[32,384], index: 1, kind: input, shape index: {}]   ;;  %s799_s2 = inlined_call_operand.hbm [shape: f32[16,128], index: 2, kind: output, shape index: {}]  }
   0x1   :  { %8 = vsyncpa [#allocation6], 0 }
   0x2   :  { %9 = vsyncpa [#allocation4], 0  ;;  %s707_s9 = smov [#allocation2]   ;;  %s635_s13 = scalar_lea.hbm %s797_s0, 256 }
   0x3   :  { %s15_s10 = sshll.u32 %s707_s9, 4  ;;  %p636_p0 = scmp.ne.s32.totalorder %s797_s0, %s635_s13  ;;  %s16_s10 = int_to_ptr.vmem [resolvable:$true] %s15_s10 }
   0x4   :  { %p639_p1 = scmp.lt.u32.totalorder %s635_s13, %s797_s0 }
   0x6   :  { %p641_p2 = pnand %p639_p1, %p636_p0 }
   0x8   :  { %644 = shalt.err (!%p641_p2)
}
   0x9   :  { %s645_s18 = scalar_lea.vmem %s16_s10, 256  ;;  %p650_p4 = scmp.lt.s32.totalorder %s16_s10, %s16_s10 }
   0xa   :  { %p646_p3 = scmp.ne.s32.totalorder %s16_s10, %s645_s18  ;;  %p651_p5 = scmp.lt.s32.totalorder %s645_s18, %s645_s18 }
   0xc   :  { %p652_p6 = por %p651_p5, %p650_p4 }
   0xe   :  { %p653_p7 = pnand %p652_p6, %p646_p3 }
  0x10   :  { %656 = shalt.err (!%p653_p7)
}
  0x11   :  { %s708_s19 = smov 128   ;;  %s709_s20 = smov 8  }
  0x12   :  { %21 = dma.hbm_to_vmem [thread:$0]  %s797_s0, 256, %s16_s10, [#allocation3], %s708_s19, %s708_s19, %s709_s20  }
  0x13   :  { %s710_s23 = smov [#allocation5]   ;;  %s657_s27 = scalar_lea.hbm %s798_s1, 1536 }
  0x14   :  { %s27_s24 = sshll.u32 %s710_s23, 4  ;;  %p658_p8 = scmp.ne.s32.totalorder %s798_s1, %s657_s27  ;;  %s28_s24 = int_to_ptr.vmem [resolvable:$true] %s27_s24 }
  0x15   :  { %p661_p9 = scmp.lt.u32.totalorder %s657_s27, %s798_s1 }
  0x17   :  { %p663_p10 = pnand %p661_p9, %p658_p8 }
  0x19   :  { %666 = shalt.err (!%p663_p10)
}
  0x1a   :  { %s667_s4 = scalar_lea.vmem %s28_s24, 1536  ;;  %p672_p12 = scmp.lt.s32.totalorder %s28_s24, %s28_s24 }
  0x1b   :  { %p668_p11 = scmp.ne.s32.totalorder %s28_s24, %s667_s4  ;;  %p673_p13 = scmp.lt.s32.totalorder %s667_s4, %s667_s4 }
  0x1d   :  { %p674_p0 = por %p673_p13, %p672_p12 }
  0x1f   :  { %p675_p1 = pnand %p674_p0, %p668_p11 }
  0x21   :  { %678 = shalt.err (!%p675_p1)
}
  0x22   :  { %s711_s0 = smov 384   ;;  %s712_s5 = smov 24  }
  0x23   :  { %33 = dma.hbm_to_vmem [thread:$0]  %s798_s1, 1536, %s28_s24, [#allocation6], %s711_s0, %s711_s0, %s712_s5  }
  0x24   :  { %701 = dma.done.wait [#allocation3], 256  }
  0x25   :  { %702 = vsyncadd [#allocation3], 4294967040 }
  0x26   :  { %703 = dma.done.wait [#allocation6], 1536  }
  0x27   :  { %704 = vsyncadd [#allocation6], 4294965760  ;;  %v713_v0 = vmov 0.0   ;;  %v43_v1 = vld [vmem:[#allocation5 + $0x8] sm:$0xff]  ;;  %v46_v2 = vld [vmem:[#allocation5 + $0x20] sm:$0xff]  ;;  %vm54_vm0 = vcmask 261120   ;;  %v213_v29 = vlaneseq }
  0x28   :  { %125 = vmatprep.mubr.f32.mxu0 %v713_v0  ;;  %v42_v3 = vld [vmem:[#allocation5] sm:$0xff]  ;;  %v602_v4 = vpack.c.bf16 %v46_v2, %v43_v1  ;;  %v45_v5 = vld [vmem:[#allocation5 + $0x18] sm:$0xff]  ;;  %v52_v7 = vld [vmem:[#allocation5 + $0x50] sm:$0xff]  ;;  %vm714_vm1 = vmmov 0   ;;  %vm290_vm3 = vcmask 64512   ;;  %s715_s1 = smov [#allocation7]  }
  0x29   :  { %v49_v6 = vld [vmem:[#allocation5 + $0x38] sm:$0xff]  ;;  %v604_v8 = vpack.c.bf16 %v45_v5, %v42_v3  ;;  %v48_v10 = vld [vmem:[#allocation5 + $0x30] sm:$0xff]  ;;  %v51_v11 = vld [vmem:[#allocation5 + $0x48] sm:$0xff]  ;;  %v214_v30 = vshrl.u32 %v213_v29, 7  ;;  %v216_v31 = vand.u32 127, %v213_v29  ;;  %s538_s8 = sshll.u32 %s715_s1, 4  ;;  %s539_s8 = int_to_ptr.vmem [resolvable:$true] %s538_s8 }
  0x2a   :  { %v606_v9 = vpack.c.bf16 %v52_v7, %v49_v6  ;;  %v40_v12 = vld [vmem:[#allocation2] sm:$0xff]  ;;  %603 = vmatprep.subr.bf16.mxu0 %v602_v4  ;;  %v47_v14 = vld [vmem:[#allocation5 + $0x28] sm:$0xff]  ;;  %v608_v15 = vpack.c.bf16 %v51_v11, %v48_v10  ;;  %v50_v17 = vld [vmem:[#allocation5 + $0x40] sm:$0xff]  ;;  %s679_s9 = scalar_lea.vmem %s539_s8, 256  ;;  %p684_p3 = scmp.lt.s32.totalorder %s539_s8, %s539_s8 }
  0x2b   :  { %v44_v13 = vld [vmem:[#allocation5 + $0x10] sm:$0xff]  ;;  %579 = vmatprep.mubr.msk.f32.mxu1 %vm54_vm0, %v40_v12  ;;  %605 = vmatpush1.bf16.msra.mxu0 %v604_v8  ;;  %v53_v18 = vld [vmem:[#allocation5 + $0x58] sm:$0xff]  ;;  %vm217_vm2 = vcmp.ge.s32.totalorder %v214_v30, %v216_v31  ;;  %p680_p2 = scmp.ne.s32.totalorder %s539_s8, %s679_s9  ;;  %p685_p4 = scmp.lt.s32.totalorder %s679_s9, %s679_s9 }
  0x2c   :  { %v610_v16 = vpack.c.bf16 %v47_v14, %v44_v13  ;;  %607 = vmatprep.subr.bf16.mxu0 %v606_v9  ;;  %v614_v19 = vpack.c.bf16 %v53_v18, %v50_v17  ;;  %v41_v20 = vld [vmem:[#allocation2 + $0x8] sm:$0xff] }
  0x2d   :  { %p686_p5 = por %p685_p4, %p684_p3 }
  0x2e   :  { %611 = vmatprep.subr.bf16.mxu1 %v610_v16 }
  0x2f   :  { %613 = vmatpush3.bf16.msra.mxu1 %v610_v16  ;;  %609 = vmatpush1.bf16.msra.mxu0 %v608_v15  ;;  %p687_p6 = pnand %p686_p5, %p680_p2 }
  0x30   :  { %615 = vmatprep.subr.bf16.mxu1 %v614_v19  ;;  %587 = vmatprep.subr.mxu0 %v713_v0 }
  0x32   :  { %551 = vmatmul.mubr.msk.f32.vlgmr.msra.gmra.mrb[0].mxu0 %vm54_vm0, %v40_v12 }
  0x33   :  { %617 = vmatpush3.bf16.msra.mxu1 %v614_v19  ;;  %131 = vmatprep.mubr.f32.mxu0 %v713_v0 }
  0x34   :  { %582 = vmatprep.subr.mxu1 %v713_v0 }
  0x36   :  { %580 = vmatmul.mubr.msk.f32.vlgmr.msra.gmra.mrb[0].mxu1 %vm54_vm0, %v41_v20  ;;  %552 = vmatmul.mubr.msk.f32.gmra.mrb[2].mxu0 %vm54_vm0, %v41_v20 }
  0x37   :  { %584 = vmatprep.mubr.msk.f32.mxu1 %vm714_vm1, %v713_v0  ;;  %589 = vmatprep.mubr.msk.f32.mxu0 %vm714_vm1, %v713_v0 }
 0x105   :  { %v127_v21 = vpop.f32.mrb[0].mxu0 }
 0x106   :  { %v129_v22 = vpop.f32.mrb[1].mxu0  ;;  %583 = vmatpush3.xpose.msra.mxu1 %v127_v21 }
 0x107   :  { %v218_v23 = vmul.f32 0.25, %v129_v22  ;;  %592 = vmatprep.subr.mxu1 %v713_v0 }
 0x109   :  { %v581_v24 = vpop.f32.mrb[0].mxu1  ;;  %v133_v25 = vpop.f32.mrb[2].mxu0  ;;  %585 = vmatmul.mubr.f32.vlgmr.msra.gmra.mrb[2].mxu1 %v218_v23 }
 0x10a   :  { %v204_v26 = vpop.f32.mrb[1].mxu1  ;;  %v135_v27 = vpop.f32.mrb[3].mxu0  ;;  %593 = vmatpush3.xpose.msra.mxu1 %v133_v25  ;;  %594 = vmatprep.mubr.msk.f32.mxu1 %vm714_vm1, %v713_v0 }
 0x10b   :  { %v376_v28 = vmul.f32 0.25, %v135_v27  ;;  %588 = vmatpush3.msra.mxu0 %v204_v26 }
 0x10c   :  { %597 = vmatprep.subr.mxu0 %v713_v0 }
 0x10d   :  { %595 = vmatmul.mubr.f32.vlgmr.msra.gmra.mrb[4].mxu1 %v376_v28 }
 0x1dc   :  { %v285_v32 = vpop.f32.mrb[2].mxu1 }
 0x1dd   :  { %v289_v33 = vsel %vm217_vm2, %v285_v32, -inf  ;;  %v586_v34 = vpop.f32.mrb[3].mxu1 }
 0x1de   :  { %v291_v35 = vsel %vm290_vm3, %v289_v33, -inf }
 0x1df   :  { %292 = vmax.xlane.f32.xlu0 %v291_v35 }
 0x1e0   :  { %v443_v36 = vpop.f32.mrb[4].mxu1 }
 0x1e1   :  { %v447_v37 = vsel %vm217_vm2, %v443_v36, -inf  ;;  %v596_v38 = vpop.f32.mrb[5].mxu1 }
 0x1e2   :  { %v448_v39 = vsel %vm290_vm3, %v447_v37, -inf }
 0x1e3   :  { %449 = vmax.xlane.f32.xlu0 %v448_v39 }
 0x26c   :  { %v293_v40 = vpop.xlane.xlu0 %292 }
 0x26d   :  { %v294_v41 = vsub.f32 %v289_v33, %v293_v40 }
 0x26f   :  { %v295_v42 = vmul.f32 1.442695, %v294_v41 }
 0x270   :  { %v450_v43 = vpop.xlane.xlu0 %449 }
 0x271   :  { %627 = vpow2.f32 %v295_v42  ;;  %v451_v44 = vsub.f32 %v447_v37, %v450_v43 }
 0x273   :  { %v452_v45 = vmul.f32 1.442695, %v451_v44 }
 0x275   :  { %629 = vpow2.f32 %v452_v45 }
 0x27b   :  { %v628_v46 = vpop.eup %627 }
 0x27c   :  { %v297_v47 = vsel %vm290_vm3, %v628_v46, 0.0 }
 0x27d   :  { %298 = vadd.xlane.f32.xlu1 %v297_v47 }
 0x27f   :  { %v630_v48 = vpop.eup %629 }
 0x280   :  { %v454_v49 = vsel %vm290_vm3, %v630_v48, 0.0 }
 0x281   :  { %455 = vadd.xlane.f32.xlu1 %v454_v49 }
 0x30a   :  { %v299_v50 = vpop.xlane.xlu1 %298 }
 0x30b   :  { %631 = vrcp.f32 %v299_v50 }
 0x30e   :  { %v456_v51 = vpop.xlane.xlu1 %455 }
 0x30f   :  { %633 = vrcp.f32 %v456_v51 }
 0x315   :  { %v632_v52 = vpop.eup %631 }
 0x316   :  { %v301_v53 = vmul.f32 %v632_v52, %v628_v46 }
 0x318   :  { %590 = vmatmul.mubr.msk.f32.vlgmr.msra.gmra.mrb[4].mxu0 %vm290_vm3, %v301_v53 }
 0x319   :  { %v634_v54 = vpop.eup %633  ;;  %598 = vmatpush3.msra.mxu0 %v581_v24  ;;  %599 = vmatprep.mubr.msk.f32.mxu0 %vm714_vm1, %v713_v0 }
 0x31a   :  { %v458_v55 = vmul.f32 %v634_v54, %v630_v48 }
 0x31c   :  { %600 = vmatmul.mubr.msk.f32.vlgmr.msra.gmra.mrb[6].mxu0 %vm290_vm3, %v458_v55 }
 0x3eb   :  { %v371_v56 = vpop.f32.mrb[4].mxu0 }
 0x3ec   :  { %375 = vst [vmem:[#allocation7] sm:$0xff] %v371_v56  ;;  %v591_v57 = vpop.f32.mrb[5].mxu0 }
 0x3ef   :  { %v528_v58 = vpop.f32.mrb[6].mxu0 }
 0x3f0   :  { %532 = vst [vmem:[#allocation7 + $0x8] sm:$0xff] %v528_v58  ;;  %v601_v59 = vpop.f32.mrb[7].mxu0 }
 0x3f1   :  { %690 = shalt.err (!%p687_p6)
}
 0x3f2   :  { %s691_s12 = scalar_lea.hbm %s799_s2, 256 }
 0x3f3   :  { %p692_p7 = scmp.ne.s32.totalorder %s799_s2, %s691_s12  ;;  %p695_p8 = scmp.lt.u32.totalorder %s691_s12, %s799_s2 }
 0x3f5   :  { %p697_p9 = pnand %p695_p8, %p692_p7 }
 0x3f7   :  { %700 = shalt.err (!%p697_p9)
}
 0x3f8   :  { %544 = dma.vmem_to_hbm [thread:$0]  %s539_s8, 256, %s799_s2, [#allocation4], %s708_s19, %s708_s19, %s709_s20  }
 0x3f9   :  { %705 = dma.done.wait [#allocation4], 256  }
 0x3fa   :  { %706 = vsyncadd [#allocation4], 4294967040 }
 0x3fb   :  { %548 = vsyncpa [#allocation3], 1 }
 0x3fc   :  { %549 = vsyncpa [#allocation6], 1 }
 0x3fd   :  { %550 = vsyncpa [#allocation4], 1 }

</bundles_post_ra>
